<compile_context>
chip_gen: v7x
topology: tpu7x:2x2x1
jax: 0.10.0
libtpu: 0.0.40
codegen_flags: <defaults>
</compile_context>

<pallas_src>
import functools

import jax
import jax.numpy as jnp
from jax.experimental import pallas as pl
from jax.experimental.pallas import tpu as pltpu


def _round_up(x, m):
    return (x + m - 1) // m * m


def _tpu_config():
    """Per-generation tile targets and scoped-VMEM limit."""
    kind = ""
    try:
        kind = jax.devices()[0].device_kind.lower()
    except Exception:
        pass
    if "v7" in kind or "7x" in kind:
        # 64 MiB physical VMEM per TensorCore -> smaller tiles, modest limit.
        return {"row_tile": 512, "k_tile": 1024, "vmem_limit": 48 * 1024 * 1024}
    # v5e / v6e: 128 MiB VMEM -> big tiles amortize the ~0.35 us/step overhead.
    return {"row_tile": 1024, "k_tile": 2048, "vmem_limit": 100 * 1024 * 1024}


def _pick_tile(n_pad, target):
    """Largest multiple of 128 that is <= target and divides n_pad."""
    t = max(128, min(target, n_pad) - (min(target, n_pad) % 128))
    while n_pad % t:
        t -= 128
    return t


# --------------------------------------------------------------------------
# Row-tiled aggregation kernel for one SAGE layer:
#   out[i_tile] = relu?( sum_k A[i_tile, k_tile] @ XWn[k_tile] + selfb[i_tile] )
# --------------------------------------------------------------------------
def _sage_agg_kernel(a_ref, xwn_ref, selfb_ref, o_ref, acc_ref, *, relu):
    k = pl.program_id(1)

    @pl.when(k == 0)
    def _():
        acc_ref[...] = jnp.zeros_like(acc_ref)

    # bf16 x bf16 MXU matmul, f32 accumulation in VMEM scratch.
    acc_ref[...] += jnp.dot(a_ref[...], xwn_ref[...],
                            preferred_element_type=jnp.float32)

    @pl.when(k == pl.num_programs(1) - 1)
    def _():
        h = acc_ref[...] + selfb_ref[...]          # f32 bias + self path
        if relu:
            h = jnp.maximum(h, 0.0)
        o_ref[...] = h.astype(o_ref.dtype)          # bf16, lane-dense store


def _sage_layer(a_p, feat, w_self, w_neigh, bias, *, relu, tm, tk, vmem_limit):
    """One SAGEConv('mean') layer. a_p: (Np, Np) padded bf16 row-normalized adj."""
    n = feat.shape[0]
    n_pad = a_p.shape[0]
    out_dim = w_self.shape[1]
    c_pad = _round_up(out_dim, 128)

    # Hoisted tiny matmuls at true feature width (XLA, f32):
    self_b = feat @ w_self + bias                       # (n, out_dim) f32
    xwn = (feat @ w_neigh).astype(jnp.bfloat16)         # (n, out_dim) bf16

    # Pad rows/cols to lane-dense, tile-divisible shapes (cheap: O(N*H)).
    self_b = jnp.pad(self_b, ((0, n_pad - n), (0, c_pad - out_dim)))
    xwn = jnp.pad(xwn, ((0, n_pad - n), (0, c_pad - out_dim)))

    kernel = functools.partial(_sage_agg_kernel, relu=relu)
    out_p = pl.pallas_call(
        kernel,
        out_shape=jax.ShapeDtypeStruct((n_pad, c_pad), jnp.bfloat16),
        grid=(n_pad // tm, n_pad // tk),
        in_specs=[
            # Adjacency streams tile-by-tile (default double-buffered pipeline;
            # bump to pl.Buffered(3) on v7x if the DMA ever becomes exposed).
            pl.BlockSpec((tm, tk), lambda i, k: (i, k)),
            pl.BlockSpec((tk, c_pad), lambda i, k: (k, 0)),   # XWn (bf16)
            pl.BlockSpec((tm, c_pad), lambda i, k: (i, 0)),   # self + bias (f32)
        ],
        out_specs=pl.BlockSpec((tm, c_pad), lambda i, k: (i, 0)),
        scratch_shapes=[pltpu.VMEM((tm, c_pad), jnp.float32)],
        compiler_params=pltpu.CompilerParams(
            dimension_semantics=("parallel", "arbitrary"),
            vmem_limit_bytes=vmem_limit),
    )(a_p, xwn, self_b)

    return out_p[:n, :out_dim]                              # bf16 (n, out_dim)


def sage_forward(a_p, x, params):
    """2-layer SAGE forward. a_p is the pre-built padded bf16 adjacency."""
    cfg = _tpu_config()
    n_pad = a_p.shape[0]
    tm = _pick_tile(n_pad, cfg["row_tile"])
    tk = _pick_tile(n_pad, cfg["k_tile"])

    h1 = _sage_layer(a_p, x, params["w_self1"], params["w_neigh1"], params["b1"],
                     relu=True, tm=tm, tk=tk, vmem_limit=cfg["vmem_limit"])
    out = _sage_layer(a_p, h1, params["w_self2"], params["w_neigh2"], params["b2"],
                      relu=False, tm=tm, tk=tk, vmem_limit=cfg["vmem_limit"])
    return out.astype(jnp.float32)


# --------------------------------------------------------------------------
# Graph / parameter helpers
# --------------------------------------------------------------------------
def build_normalized_adjacency(src, dst, num_nodes, num_nodes_padded):
    """Padded, row-normalized, bf16 dense adjacency: A[i, j] = 1/deg_in(i) iff j->i.

    Built once (already padded + cast) so the per-call wrapper never touches the
    N^2 matrix before the kernel streams it.
    """
    a = jnp.zeros((num_nodes_padded, num_nodes_padded), jnp.float32)
    a = a.at[dst, src].add(1.0)
    deg = jnp.maximum(jnp.sum(a, axis=1, keepdims=True), 1.0)   # 0-in-degree -> 0 agg
    return (a / deg).astype(jnp.bfloat16)


def init_params(key, in_feats, hid_feats, out_feats):
    ks = jax.random.split(key, 4)

    def lin(k, fan_in, fan_out):
        bound = 1.0 / jnp.sqrt(jnp.float32(fan_in))
        return jax.random.uniform(k, (fan_in, fan_out), jnp.float32, -bound, bound)

    return {
        "w_self1":  lin(ks[0], in_feats, hid_feats),
        "w_neigh1": lin(ks[1], in_feats, hid_feats),
        "b1":       jnp.zeros((hid_feats,), jnp.float32),
        "w_self2":  lin(ks[2], hid_feats, out_feats),
        "w_neigh2": lin(ks[3], hid_feats, out_feats),
        "b2":       jnp.zeros((out_feats,), jnp.float32),
    }


if __name__ == "__main__":
    key = jax.random.PRNGKey(0)
    k_feat, k_param = jax.random.split(key, 2)

    num_nodes = 16
    in_feats, hid_feats, out_feats = 8, 32, 8

    cfg = _tpu_config()
    n_pad = _round_up(num_nodes, 128)                 # lane/tile-dense node dim

    # Deterministic synthetic graph: a ring plus a few extra edges.
    src = jnp.concatenate([
        jnp.arange(num_nodes, dtype=jnp.int32),
        jnp.array([0, 3, 5, 7, 11], dtype=jnp.int32),
    ])
    dst = jnp.concatenate([
        (jnp.arange(num_nodes, dtype=jnp.int32) + 1) % num_nodes,
        jnp.array([8, 12, 2, 14, 4], dtype=jnp.int32),
    ])
    a_p = build_normalized_adjacency(src, dst, num_nodes, n_pad)   # padded bf16

    x = jax.random.normal(k_feat, (num_nodes, in_feats), jnp.float32)
    params = init_params(k_param, in_feats, hid_feats, out_feats)

    out = sage_forward(a_p, x, params)
    jax.block_until_ready(out)
    assert out.shape == (num_nodes, out_feats)

    # ---------------- reference check (f32, DGL 'mean' semantics) ----------------
    a_f32 = a_p[:num_nodes, :num_nodes].astype(jnp.float32)

    def ref_layer(a, xx, ws, wn, b, relu):
        h = xx @ ws + a @ (xx @ wn) + b
        return jnp.maximum(h, 0.0) if relu else h

    ref = ref_layer(a_f32, x, params["w_self1"], params["w_neigh1"], params["b1"], True)
    ref = ref_layer(a_f32, ref, params["w_self2"], params["w_neigh2"], params["b2"], False)
    assert bool(jnp.allclose(out, ref, atol=1e-1, rtol=1e-1)), "mismatch vs reference"
    assert bool(jnp.all(jnp.isfinite(out)))

    print("KERNEL_OK")
</pallas_src>

<mosaic_0001>
module attributes {stable_mosaic.version = 11 : i64} {
  func.func @_sage_agg_kernel(%arg0: i32, %arg1: i32, %arg2: memref<128x128xbf16, #tpu.memory_space<vmem>>, %arg3: memref<128x128xbf16, #tpu.memory_space<vmem>>, %arg4: memref<128x128xf32, #tpu.memory_space<vmem>>, %arg5: memref<128x128xbf16, #tpu.memory_space<vmem>>, %arg6: memref<128x128xf32, #tpu.memory_space<vmem>>) attributes {dimension_semantics = [#tpu.dimension_semantics<parallel>, #tpu.dimension_semantics<arbitrary>], iteration_bounds = array<i64: 1, 1>, scalar_prefetch = 0 : i64, scratch_operands = 1 : i64, tpu.core_type = #tpu.core_type<tc>, window_params = [{transform_indices = @transform_0, window_bounds = array<i64: 128, 128>}, {transform_indices = @transform_1, window_bounds = array<i64: 128, 128>}, {transform_indices = @transform_2, window_bounds = array<i64: 128, 128>}, {transform_indices = @transform_3, window_bounds = array<i64: 128, 128>}]} {
    %c0_i32 = arith.constant 0 : i32
    %0 = arith.cmpi eq, %arg1, %c0_i32 : i32
    %1 = arith.extui %0 : i1 to i32
    %c0_i32_0 = arith.constant 0 : i32
    %2 = arith.cmpi ne, %1, %c0_i32_0 : i32
    scf.if %2 {
      %cst_10 = arith.constant 0.000000e+00 : f32
      %12 = vector.broadcast %cst_10 : f32 to vector<128x128xf32>
      %c0_11 = arith.constant 0 : index
      %c0_12 = arith.constant 0 : index
      %13 = vector.load %arg6[%c0_11, %c0_12] : memref<128x128xf32, #tpu.memory_space<vmem>>, vector<128x128xf32>
      tpu.vector_store %arg6[%c0_11, %c0_12], %12 {strides = array<i32>} : memref<128x128xf32, #tpu.memory_space<vmem>>, vector<128x128xf32>,
    } else {
    }
    %c0 = arith.constant 0 : index
    %c0_1 = arith.constant 0 : index
    %3 = vector.load %arg6[%c0, %c0_1] : memref<128x128xf32, #tpu.memory_space<vmem>>, vector<128x128xf32>
    %c0_2 = arith.constant 0 : index
    %c0_3 = arith.constant 0 : index
    %4 = vector.load %arg2[%c0_2, %c0_3] : memref<128x128xbf16, #tpu.memory_space<vmem>>, vector<128x128xbf16>
    %c0_4 = arith.constant 0 : index
    %c0_5 = arith.constant 0 : index
    %5 = vector.load %arg3[%c0_4, %c0_5] : memref<128x128xbf16, #tpu.memory_space<vmem>>, vector<128x128xbf16>
    %cst = arith.constant dense<0.000000e+00> : vector<128x128xf32>
    %6 = tpu.matmul %4, %5, %cst {dimension_numbers = #tpu.dot_dimension_numbers<[1], [0], [0], [1], [0, 0, 1, 1], [], []>} : vector<128x128xbf16>, vector<128x128xbf16>, vector<128x128xf32> -> vector<128x128xf32>
    %7 = arith.addf %3, %6 : vector<128x128xf32>
    %c0_6 = arith.constant 0 : index
    %c0_7 = arith.constant 0 : index
    %8 = vector.load %arg6[%c0_6, %c0_7] : memref<128x128xf32, #tpu.memory_space<vmem>>, vector<128x128xf32>
    tpu.vector_store %arg6[%c0_6, %c0_7], %7 {strides = array<i32>} : memref<128x128xf32, #tpu.memory_space<vmem>>, vector<128x128xf32>,
    %c0_i32_8 = arith.constant 0 : i32
    %9 = arith.cmpi eq, %arg1, %c0_i32_8 : i32
    %10 = arith.extui %9 : i1 to i32
    %c0_i32_9 = arith.constant 0 : i32
    %11 = arith.cmpi ne, %10, %c0_i32_9 : i32
    scf.if %11 {
      %c0_10 = arith.constant 0 : index
      %c0_11 = arith.constant 0 : index
      %12 = vector.load %arg6[%c0_10, %c0_11] : memref<128x128xf32, #tpu.memory_space<vmem>>, vector<128x128xf32>
      %c0_12 = arith.constant 0 : index
      %c0_13 = arith.constant 0 : index
      %13 = vector.load %arg4[%c0_12, %c0_13] : memref<128x128xf32, #tpu.memory_space<vmem>>, vector<128x128xf32>
      %14 = arith.addf %12, %13 : vector<128x128xf32>
      %cst_14 = arith.constant 0.000000e+00 : f32
      %15 = vector.broadcast %cst_14 : f32 to vector<128x128xf32>
      %16 = arith.maximumf %14, %15 : vector<128x128xf32>
      %17 = arith.truncf %16 : vector<128x128xf32> to vector<128x128xbf16>
      %c0_15 = arith.constant 0 : index
      %c0_16 = arith.constant 0 : index
      %18 = vector.load %arg5[%c0_15, %c0_16] : memref<128x128xbf16, #tpu.memory_space<vmem>>, vector<128x128xbf16>
      tpu.vector_store %arg5[%c0_15, %c0_16], %17 {strides = array<i32>} : memref<128x128xbf16, #tpu.memory_space<vmem>>, vector<128x128xbf16>,
    } else {
    }
    return
  }
  func.func @transform_0(%arg0: i32, %arg1: i32) -> (i32, i32) {
    %c0_i32 = arith.constant 0 : i32
    return %arg0, %arg1 : i32, i32
  }
  func.func @transform_1(%arg0: i32, %arg1: i32) -> (i32, i32) {
    %c0_i32 = arith.constant 0 : i32
    %c0_i32_0 = arith.constant 0 : i32
    return %arg1, %c0_i32 : i32, i32
  }
  func.func @transform_2(%arg0: i32, %arg1: i32) -> (i32, i32) {
    %c0_i32 = arith.constant 0 : i32
    %c0_i32_0 = arith.constant 0 : i32
    return %arg0, %c0_i32 : i32, i32
  }
  func.func @transform_3(%arg0: i32, %arg1: i32) -> (i32, i32) {
    %c0_i32 = arith.constant 0 : i32
    %c0_i32_0 = arith.constant 0 : i32
    return %arg0, %c0_i32 : i32, i32
  }
}

</mosaic_0001>

<bundles_post_ra>
// kernel: tpu_custom_call.1
= control target key start
LH: loop header
LB: loop body
LE: loop exit
PB: predicated region body
PF: predicated region fallthrough
CT: control target
= control target key end

     0   :  { %8 = vsyncpa [#allocation4], 0  ;;  %s884_s0 = inlined_call_operand.hbm [shape: bf16[128,128], index: 0, kind: input, shape index: {}]   ;;  %s885_s1 = inlined_call_operand.hbm [shape: bf16[128,128], index: 1, kind: input, shape index: {}]   ;;  %s886_s2 = inlined_call_operand.hbm [shape: f32[128,128], index: 2, kind: input, shape index: {}]   ;;  %s887_s3 = inlined_call_operand.hbm [shape: bf16[128,128], index: 3, kind: output, shape index: {}]  }
   0x1   :  { %9 = vsyncpa [#allocation7], 0 }
   0x2   :  { %10 = vsyncpa [#allocation5], 0  ;;  %s792_s12 = smov [#allocation6]   ;;  %s793_s14 = smov [#allocation3]  }
   0x3   :  { %s28_s13 = sshll.u32 %s792_s12, 4  ;;  %s16_s15 = sshll.u32 %s793_s14, 4  ;;  %s29_s13 = int_to_ptr.vmem [resolvable:$true] %s28_s13  ;;  %s820_s15 = int_to_ptr.vmem [resolvable:$true] %s16_s15 }
   0x4   :  { %s698_s18 = scalar_lea.hbm %s885_s1, 1024 }
   0x5   :  { %p699_p0 = scmp.ne.s32.totalorder %s885_s1, %s698_s18  ;;  %p702_p1 = scmp.lt.u32.totalorder %s698_s18, %s885_s1 }
   0x7   :  { %p704_p2 = pnand %p702_p1, %p699_p0 }
   0x9   :  { %707 = shalt.err (!%p704_p2)
}
   0xa   :  { %s708_s23 = scalar_lea.vmem %s29_s13, 1024  ;;  %p713_p4 = scmp.lt.s32.totalorder %s29_s13, %s29_s13 }
   0xb   :  { %p709_p3 = scmp.ne.s32.totalorder %s29_s13, %s708_s23  ;;  %p714_p5 = scmp.lt.s32.totalorder %s708_s23, %s708_s23 }
   0xd   :  { %p715_p6 = por %p714_p5, %p713_p4 }
   0xf   :  { %p716_p7 = pnand %p715_p6, %p709_p3 }
  0x11   :  { %719 = shalt.err (!%p716_p7)
}
  0x12   :  { %s794_s24 = smov 64   ;;  %s795_s25 = smov 4  }
  0x13   :  { %34 = dma.hbm_to_vmem [thread:$0]  %s885_s1, 1024, %s29_s13, [#allocation7], %s794_s24, %s794_s24, %s795_s25  }
  0x14   :  { %s720_s30 = scalar_lea.hbm %s884_s0, 1024 }
  0x15   :  { %p721_p8 = scmp.ne.s32.totalorder %s884_s0, %s720_s30  ;;  %p724_p9 = scmp.lt.u32.totalorder %s720_s30, %s884_s0 }
  0x17   :  { %p726_p10 = pnand %p724_p9, %p721_p8 }
  0x19   :  { %729 = shalt.err (!%p726_p10)
}
  0x1a   :  { %s730_s8 = scalar_lea.vmem %s820_s15, 1024  ;;  %p735_p12 = scmp.lt.s32.totalorder %s820_s15, %s820_s15 }
  0x1b   :  { %p731_p11 = scmp.ne.s32.totalorder %s820_s15, %s730_s8  ;;  %p736_p13 = scmp.lt.s32.totalorder %s730_s8, %s730_s8 }
  0x1d   :  { %p737_p0 = por %p736_p13, %p735_p12 }
  0x1f   :  { %p738_p1 = pnand %p737_p0, %p731_p11 }
  0x21   :  { %741 = shalt.err (!%p738_p1)
}
  0x22   :  { %22 = dma.hbm_to_vmem [thread:$0]  %s884_s0, 1024, %s820_s15, [#allocation4], %s794_s24, %s794_s24, %s795_s25  }
  0x23   :  { %s796_s10 = smov [#allocation8]   ;;  %s742_s14 = scalar_lea.hbm %s886_s2, 2048 }
  0x24   :  { %s40_s11 = sshll.u32 %s796_s10, 4  ;;  %p743_p2 = scmp.ne.s32.totalorder %s886_s2, %s742_s14  ;;  %s41_s11 = int_to_ptr.vmem [resolvable:$true] %s40_s11 }
  0x25   :  { %p746_p3 = scmp.lt.u32.totalorder %s742_s14, %s886_s2 }
  0x27   :  { %p748_p4 = pnand %p746_p3, %p743_p2 }
  0x29   :  { %751 = shalt.err (!%p748_p4)
}
  0x2a   :  { %s752_s20 = scalar_lea.vmem %s41_s11, 2048  ;;  %p757_p6 = scmp.lt.s32.totalorder %s41_s11, %s41_s11 }
  0x2b   :  { %p753_p5 = scmp.ne.s32.totalorder %s41_s11, %s752_s20  ;;  %p758_p7 = scmp.lt.s32.totalorder %s752_s20, %s752_s20 }
  0x2d   :  { %p759_p8 = por %p758_p7, %p757_p6 }
  0x2f   :  { %p760_p9 = pnand %p759_p8, %p753_p5 }
  0x31   :  { %763 = shalt.err (!%p760_p9)
}
  0x32   :  { %s797_s0 = smov 128   ;;  %s798_s15 = smov 8  }
  0x33   :  { %46 = dma.hbm_to_vmem [thread:$0]  %s886_s2, 2048, %s41_s11, [#allocation7], %s797_s0, %s797_s0, %s798_s15  }
  0x34   :  { %786 = dma.done.wait [#allocation4], 1024  }
  0x35   :  { %787 = vsyncadd [#allocation4], 4294966272 }
  0x36   :  { %788 = dma.done.wait [#allocation7], 3072  }
  0x37   :  { %789 = vsyncadd [#allocation7], 4294964224  ;;  %v682_v0 = vld [vmem:[#allocation6] sm:$0xff]   ;;  %v683_v1 = vld [vmem:[#allocation6 + $0x8] sm:$0xff]   ;;  %s799_s2 = smov [#allocation9]  }
  0x38   :  { %626 = vmatprep.subr.bf16.mxu0 %v682_v0  ;;  %658 = vmatprep.subr.bf16.mxu1 %v682_v0  ;;  %v684_v2 = vld [vmem:[#allocation6 + $0x10] sm:$0xff]   ;;  %v685_v3 = vld [vmem:[#allocation6 + $0x18] sm:$0xff]   ;;  %v690_v4 = vld [vmem:[#allocation3] sm:$0xff]   ;;  %s502_s23 = sshll.u32 %s799_s2, 4  ;;  %s503_s23 = int_to_ptr.vmem [resolvable:$true] %s502_s23 }
  0x39   :  { %627 = vmatpush3.bf16.msra.mxu0 %v682_v0  ;;  %666 = vmatpush3.bf16.msra.mxu1 %v682_v0  ;;  %v691_v5 = vld [vmem:[#allocation3 + $0x20] sm:$0xff]   ;;  %v687_v7 = vld [vmem:[#allocation6 + $0x28] sm:$0xff]   ;;  %v688_v8 = vld [vmem:[#allocation6 + $0x30] sm:$0xff]   ;;  %s764_s26 = scalar_lea.vmem %s503_s23, 1024  ;;  %p769_p11 = scmp.lt.s32.totalorder %s503_s23, %s503_s23 }
  0x3a   :  { %628 = vmatprep.subr.bf16.mxu0 %v683_v1  ;;  %659 = vmatprep.subr.bf16.mxu1 %v683_v1  ;;  %v686_v6 = vld [vmem:[#allocation6 + $0x20] sm:$0xff]   ;;  %v689_v9 = vld [vmem:[#allocation6 + $0x38] sm:$0xff]   ;;  %v692_v10 = vld [vmem:[#allocation3 + $0x8] sm:$0xff]   ;;  %p765_p10 = scmp.ne.s32.totalorder %s503_s23, %s764_s26  ;;  %p770_p12 = scmp.lt.s32.totalorder %s764_s26, %s764_s26 }
  0x3b   :  { %642 = vmatprep.mubr.bf16.mxu0 %v690_v4  ;;  %650 = vmatprep.mubr.bf16.mxu1 %v691_v5  ;;  %v693_v11 = vld [vmem:[#allocation3 + $0x28] sm:$0xff]   ;;  %v694_v12 = vld [vmem:[#allocation3 + $0x10] sm:$0xff]   ;;  %v696_v14 = vld [vmem:[#allocation3 + $0x18] sm:$0xff]  }
  0x3c   :  { %v695_v13 = vld [vmem:[#allocation3 + $0x30] sm:$0xff]   ;;  %v697_v15 = vld [vmem:[#allocation3 + $0x38] sm:$0xff]   ;;  %v369_v18 = vld [vmem:[#allocation8] sm:$0xff]  ;;  %p771_p13 = por %p770_p12, %p769_p11 }
  0x3d   :  { %629 = vmatpush3.bf16.msra.mxu0 %v683_v1  ;;  %667 = vmatpush3.bf16.msra.mxu1 %v683_v1  ;;  %v371_v16 = vld [vmem:[#allocation8 + $0x10] sm:$0xff]  ;;  %v377_v19 = vld [vmem:[#allocation8 + $0x40] sm:$0xff]  ;;  %v372_v22 = vld [vmem:[#allocation8 + $0x18] sm:$0xff] }
  0x3e   :  { %630 = vmatprep.subr.bf16.mxu0 %v684_v2  ;;  %660 = vmatprep.subr.bf16.mxu1 %v684_v2  ;;  %v379_v17 = vld [vmem:[#allocation8 + $0x50] sm:$0xff]  ;;  %v380_v23 = vld [vmem:[#allocation8 + $0x58] sm:$0xff]  ;;  %v370_v28 = vld [vmem:[#allocation8 + $0x8] sm:$0xff]  ;;  %p772_p0 = pnand %p771_p13, %p765_p10 }
  0x3f   :  { %v378_v29 = vld [vmem:[#allocation8 + $0x48] sm:$0xff]  ;;  %v375_v48 = vld [vmem:[#allocation8 + $0x30] sm:$0xff]  ;;  %v373_v52 = vld [vmem:[#allocation8 + $0x20] sm:$0xff] }
  0x40   :  { %v383_v49 = vld [vmem:[#allocation8 + $0x70] sm:$0xff]  ;;  %v381_v53 = vld [vmem:[#allocation8 + $0x60] sm:$0xff]  ;;  %v376_v58 = vld [vmem:[#allocation8 + $0x38] sm:$0xff] }
  0x41   :  { %631 = vmatpush3.bf16.msra.mxu0 %v684_v2  ;;  %668 = vmatpush3.bf16.msra.mxu1 %v684_v2  ;;  %v384_v59 = vld [vmem:[#allocation8 + $0x78] sm:$0xff]  ;;  %v374_v0 = vld [vmem:[#allocation8 + $0x28] sm:$0xff] }
  0x42   :  { %632 = vmatprep.subr.bf16.mxu0 %v685_v3  ;;  %661 = vmatprep.subr.bf16.mxu1 %v685_v3  ;;  %v382_v1 = vld [vmem:[#allocation8 + $0x68] sm:$0xff] }
  0x45   :  { %633 = vmatpush3.bf16.msra.mxu0 %v685_v3  ;;  %669 = vmatpush3.bf16.msra.mxu1 %v685_v3 }
  0x46   :  { %634 = vmatprep.subr.bf16.mxu0 %v686_v6  ;;  %662 = vmatprep.subr.bf16.mxu1 %v686_v6 }
  0x49   :  { %635 = vmatpush3.bf16.msra.mxu0 %v686_v6  ;;  %670 = vmatpush3.bf16.msra.mxu1 %v686_v6 }
  0x4a   :  { %636 = vmatprep.subr.bf16.mxu0 %v687_v7  ;;  %663 = vmatprep.subr.bf16.mxu1 %v687_v7 }
  0x4d   :  { %637 = vmatpush3.bf16.msra.mxu0 %v687_v7  ;;  %671 = vmatpush3.bf16.msra.mxu1 %v687_v7 }
  0x4e   :  { %638 = vmatprep.subr.bf16.mxu0 %v688_v8  ;;  %664 = vmatprep.subr.bf16.mxu1 %v688_v8 }
  0x51   :  { %639 = vmatpush3.bf16.msra.mxu0 %v688_v8  ;;  %672 = vmatpush3.bf16.msra.mxu1 %v688_v8 }
  0x52   :  { %640 = vmatprep.subr.bf16.mxu0 %v689_v9  ;;  %665 = vmatprep.subr.bf16.mxu1 %v689_v9 }
  0x55   :  { %641 = vmatpush3.bf16.msra.mxu0 %v689_v9  ;;  %673 = vmatpush3.bf16.msra.mxu1 %v689_v9 }
  0x58   :  { %643 = vmatmul.mubr.bf16.vlgmr.msra.gmra.mrb[0].mxu0 %v692_v10  ;;  %651 = vmatmul.mubr.bf16.vlgmr.msra.gmra.mrb[0].mxu1 %v693_v11 }
  0x59   :  { %646 = vmatprep.mubr.bf16.mxu0 %v694_v12  ;;  %654 = vmatprep.mubr.bf16.mxu1 %v695_v13 }
  0x60   :  { %647 = vmatmul.mubr.bf16.gmra.mrb[4].mxu0 %v696_v14  ;;  %655 = vmatmul.mubr.bf16.gmra.mrb[4].mxu1 %v697_v15 }
 0x12b   :  { %v644_v20 = vpop.f32.mrb[0].mxu0  ;;  %v652_v21 = vpop.f32.mrb[0].mxu1 }
 0x12c   :  { %v387_v24 = vadd.f32 %v644_v20, %v371_v16  ;;  %v395_v25 = vadd.f32 %v652_v21, %v379_v17  ;;  %v255_v26 = vpop.f32.mrb[1].mxu0  ;;  %v287_v27 = vpop.f32.mrb[1].mxu1 }
 0x12d   :  { %v385_v30 = vadd.f32 %v369_v18, %v255_v26  ;;  %v393_v31 = vadd.f32 %v377_v19, %v287_v27  ;;  %v645_v32 = vpop.f32.mrb[2].mxu0  ;;  %v653_v33 = vpop.f32.mrb[2].mxu1 }
 0x12e   :  { %v388_v34 = vadd.f32 %v645_v32, %v372_v22  ;;  %v396_v35 = vadd.f32 %v653_v33, %v380_v23  ;;  %v258_v36 = vpop.f32.mrb[3].mxu0  ;;  %v290_v37 = vpop.f32.mrb[3].mxu1  ;;  %v403_v40 = vmax.f32 %v387_v24, 0.0  ;;  %v411_v41 = vmax.f32 %v395_v25, 0.0 }
 0x12f   :  { %v386_v38 = vadd.f32 %v370_v28, %v258_v36  ;;  %v394_v39 = vadd.f32 %v378_v29, %v290_v37  ;;  %v401_v44 = vmax.f32 %v385_v30, 0.0  ;;  %v409_v45 = vmax.f32 %v393_v31, 0.0 }
 0x130   :  { %v404_v42 = vmax.f32 %v388_v34, 0.0  ;;  %v412_v43 = vmax.f32 %v396_v35, 0.0 }
 0x131   :  { %v402_v46 = vmax.f32 %v386_v38, 0.0  ;;  %v410_v47 = vmax.f32 %v394_v39, 0.0 }
 0x132   :  { %v571_v50 = vpack.c.bf16 %v404_v42, %v403_v40  ;;  %v591_v51 = vpack.c.bf16 %v412_v43, %v411_v41 }
 0x133   :  { %v566_v54 = vpack.c.bf16 %v402_v46, %v401_v44  ;;  %v586_v55 = vpack.c.bf16 %v410_v47, %v409_v45  ;;  %v648_v56 = vpop.f32.mrb[4].mxu0  ;;  %v656_v57 = vpop.f32.mrb[4].mxu1 }
 0x134   :  { %603 = vst [vmem:[#allocation9 + $0x8] sm:$0xff] %v571_v50   ;;  %607 = vst [vmem:[#allocation9 + $0x28] sm:$0xff] %v591_v51   ;;  %v391_v60 = vadd.f32 %v648_v56, %v375_v48  ;;  %v399_v61 = vadd.f32 %v656_v57, %v383_v49  ;;  %v271_v62 = vpop.f32.mrb[5].mxu0  ;;  %v303_v63 = vpop.f32.mrb[5].mxu1 }
 0x135   :  { %567 = vst [vmem:[#allocation9] sm:$0xff] %v566_v54   ;;  %606 = vst [vmem:[#allocation9 + $0x20] sm:$0xff] %v586_v55   ;;  %v389_v2 = vadd.f32 %v373_v52, %v271_v62  ;;  %v397_v3 = vadd.f32 %v381_v53, %v303_v63  ;;  %v649_v4 = vpop.f32.mrb[6].mxu0  ;;  %v657_v5 = vpop.f32.mrb[6].mxu1 }
 0x136   :  { %v392_v6 = vadd.f32 %v649_v4, %v376_v58  ;;  %v400_v7 = vadd.f32 %v657_v5, %v384_v59  ;;  %v274_v8 = vpop.f32.mrb[7].mxu0  ;;  %v306_v9 = vpop.f32.mrb[7].mxu1  ;;  %v407_v12 = vmax.f32 %v391_v60, 0.0  ;;  %v415_v13 = vmax.f32 %v399_v61, 0.0 }
 0x137   :  { %v390_v10 = vadd.f32 %v374_v0, %v274_v8  ;;  %v398_v11 = vadd.f32 %v382_v1, %v306_v9  ;;  %v405_v16 = vmax.f32 %v389_v2, 0.0  ;;  %v413_v17 = vmax.f32 %v397_v3, 0.0 }
 0x138   :  { %v408_v14 = vmax.f32 %v392_v6, 0.0  ;;  %v416_v15 = vmax.f32 %v400_v7, 0.0 }
 0x139   :  { %v406_v18 = vmax.f32 %v390_v10, 0.0  ;;  %v414_v19 = vmax.f32 %v398_v11, 0.0 }
 0x13a   :  { %v581_v20 = vpack.c.bf16 %v408_v14, %v407_v12  ;;  %v601_v21 = vpack.c.bf16 %v416_v15, %v415_v13 }
 0x13b   :  { %v576_v22 = vpack.c.bf16 %v406_v18, %v405_v16  ;;  %v596_v23 = vpack.c.bf16 %v414_v19, %v413_v17 }
 0x13c   :  { %605 = vst [vmem:[#allocation9 + $0x18] sm:$0xff] %v581_v20   ;;  %609 = vst [vmem:[#allocation9 + $0x38] sm:$0xff] %v601_v21  }
 0x13d   :  { %604 = vst [vmem:[#allocation9 + $0x10] sm:$0xff] %v576_v22   ;;  %608 = vst [vmem:[#allocation9 + $0x30] sm:$0xff] %v596_v23  }
 0x13e   :  { %775 = shalt.err (!%p772_p0)
}
 0x13f   :  { %s776_s29 = scalar_lea.hbm %s887_s3, 1024 }
 0x140   :  { %p777_p1 = scmp.ne.s32.totalorder %s887_s3, %s776_s29  ;;  %p780_p2 = scmp.lt.u32.totalorder %s776_s29, %s887_s3 }
 0x142   :  { %p782_p3 = pnand %p780_p2, %p777_p1 }
 0x144   :  { %785 = shalt.err (!%p782_p3)
}
 0x145   :  { %508 = dma.vmem_to_hbm [thread:$0]  %s503_s23, 1024, %s887_s3, [#allocation5], %s794_s24, %s794_s24, %s795_s25  }
 0x146   :  { %790 = dma.done.wait [#allocation5], 1024  }
 0x147   :  { %791 = vsyncadd [#allocation5], 4294966272 }
 0x148   :  { %512 = vsyncpa [#allocation4], 1 }
 0x149   :  { %513 = vsyncpa [#allocation7], 1 }
 0x14a   :  { %514 = vsyncpa [#allocation5], 1 }

</bundles_post_ra>
